<compile_context>
chip_gen: v7x
topology: tpu7x:2x2x1
jax: 0.10.0
libtpu: 0.0.40
codegen_flags: <defaults>
</compile_context>

<pallas_src>
import numpy as np
import jax
import jax.numpy as jnp
from jax import lax
from jax.experimental import pallas as pl
from jax.experimental.pallas import tpu as pltpu

# Problem sizes (from the PyTorch module: x1 = torch.randn(1, 5, 8, 8))
N, CIN, H, W = 1, 5, 8, 8
COUT, K, PAD = 16, 7, 3
EFF_PAD = K - 1 - PAD          # = 3: equivalent "same"-conv padding (reference only)
HW = H * W                     # 64
IN_F = CIN * HW                # 320  (contraction length; 320 % 8 == 0)
OUT_F = COUT * HW              # 1024 (lane-dense: 8 * 128)


def _convT_act_kernel(x_ref, w_ref, b_ref, out_ref):
    # x_ref:   (TB, IN_F)     raw NCHW-flattened images
    # w_ref:   (IN_F, OUT_F)  dense conv-transpose operator (resident across grid)
    # b_ref:   (1, OUT_F)     bias already expanded to NCHW-flatten order
    # out_ref: (TB, OUT_F)    NCHW-flattened activations (lane-dense stores)
    acc = jnp.dot(x_ref[...], w_ref[...],
                  preferred_element_type=jnp.float32)      # single MXU matmul
    v = acc + b_ref[...]
    v = jnp.maximum(v, 0.0)        # relu
    v = jax.nn.sigmoid(v)          # sigmoid
    v = jnp.tanh(v)                # tanh
    v = jnp.tanh(v)                # tanh
    out_ref[...] = v.astype(out_ref.dtype)


def prepare_params(weight, bias):
    """One-time (hoisted) transform: materialize ConvTranspose2d(5,16,7,stride=1,
    padding=3) on the fixed 8x8 grid as a dense (IN_F, OUT_F) matrix in the
    NCHW-flatten bases, plus the bias expanded to flatten order.

    weight: (CIN, COUT, K, K) PyTorch ConvTranspose2d layout; bias: (COUT,).
    Transposed-conv index relation (stride 1): oh = ih + kh - PAD, ow = iw + kw - PAD.
    """
    w = np.asarray(weight, dtype=np.float32)
    wd = np.zeros((CIN, H, W, COUT, H, W), dtype=np.float32)
    for kh in range(K):
        dh = kh - PAD
        for kw in range(K):
            dw = kw - PAD
            for ih in range(H):
                oh = ih + dh
                if oh < 0 or oh >= H:
                    continue
                for iw in range(W):
                    ow = iw + dw
                    if ow < 0 or ow >= W:
                        continue
                    wd[:, ih, iw, :, oh, ow] += w[:, :, kh, kw]
    w_mat = jnp.asarray(wd.reshape(IN_F, OUT_F))                               # (320, 1024)
    b_mat = jnp.asarray(np.repeat(np.asarray(bias, np.float32), HW)[None, :])  # (1, 1024)
    return w_mat, b_mat


def _pick_batch_block(n):
    """Images per grid step: prefer a sublane-aligned (multiple of 8) divisor of n
    so the grid has >=2 steps for megacore sharding at batch; otherwise take the
    whole batch as one full-dim block (always a legal BlockSpec)."""
    for tb in (64, 32, 16, 8):
        if n % tb == 0:
            return tb
    return n


@jax.jit
def forward(x_nchw, w_mat, b_mat):
    """x_nchw: (N, CIN, H, W). Returns (N, COUT*H*W) matching the PyTorch module."""
    n = x_nchw.shape[0]
    x_flat = x_nchw.reshape(n, IN_F).astype(jnp.float32)   # free reshape, no data movement
    tb = _pick_batch_block(n)
    out = pl.pallas_call(
        _convT_act_kernel,
        out_shape=jax.ShapeDtypeStruct((n, OUT_F), jnp.float32),
        grid=(n // tb,),
        in_specs=[
            pl.BlockSpec((tb, IN_F), lambda b: (b, 0)),
            pl.BlockSpec((IN_F, OUT_F), lambda b: (0, 0)),   # constant -> stays resident
            pl.BlockSpec((1, OUT_F), lambda b: (0, 0)),
        ],
        out_specs=pl.BlockSpec((tb, OUT_F), lambda b: (b, 0)),
        compiler_params=pltpu.CompilerParams(
            dimension_semantics=("parallel",)),
    )(x_flat, w_mat, b_mat)
    return out                                              # already NCHW-flatten order


def _reference(x_nchw, weight, bias):
    # Pure-JAX reference: equivalent flipped-kernel direct convolution (f32-accurate).
    x_nhwc = jnp.transpose(x_nchw, (0, 2, 3, 1))
    w_eff = jnp.transpose(jnp.flip(weight, axis=(2, 3)), (2, 3, 0, 1))   # HWIO
    y = lax.conv_general_dilated(
        x_nhwc, w_eff, window_strides=(1, 1),
        padding=[(EFF_PAD, EFF_PAD), (EFF_PAD, EFF_PAD)],
        dimension_numbers=("NHWC", "HWIO", "NHWC"),
        precision=lax.Precision.HIGHEST)
    y = y + bias[None, None, None, :]
    v = jnp.maximum(y, 0.0)
    v = jax.nn.sigmoid(v)
    v = jnp.tanh(jnp.tanh(v))
    v = jnp.transpose(v, (0, 3, 1, 2))
    return v.reshape(v.shape[0], -1)


if __name__ == "__main__":
    key = jax.random.PRNGKey(0)
    kx, kw, kb = jax.random.split(key, 3)
    # Deterministic synthetic inputs/params (shapes per ConvTranspose2d(5, 16, 7)):
    x1 = jax.random.normal(kx, (N, CIN, H, W), dtype=jnp.float32)
    weight = jax.random.normal(kw, (CIN, COUT, K, K), dtype=jnp.float32) * 0.05
    bias = jax.random.normal(kb, (COUT,), dtype=jnp.float32) * 0.05

    w_mat, b_mat = prepare_params(weight, bias)   # hoisted, one-time weight transform
    out = forward(x1, w_mat, b_mat)
    out = jax.block_until_ready(out)

    ref = _reference(x1, weight, bias)
    assert out.shape == (N, OUT_F)
    max_err = float(jnp.max(jnp.abs(out - ref)))
    assert jnp.allclose(out, ref, atol=1e-4, rtol=1e-5), max_err
    print("KERNEL_OK")
</pallas_src>

<mosaic_0001>
module attributes {stable_mosaic.version = 11 : i64} {
  func.func @_convT_act_kernel(%arg0: i32, %arg1: memref<1x320xf32, #tpu.memory_space<vmem>>, %arg2: memref<320x1024xf32, #tpu.memory_space<vmem>>, %arg3: memref<1x1024xf32, #tpu.memory_space<vmem>>, %arg4: memref<1x1024xf32, #tpu.memory_space<vmem>>) attributes {dimension_semantics = [#tpu.dimension_semantics<parallel>], iteration_bounds = array<i64: 1>, scalar_prefetch = 0 : i64, scratch_operands = 0 : i64, tpu.core_type = #tpu.core_type<tc>, window_params = [{transform_indices = @transform_0, window_bounds = array<i64: 1, 320>}, {pipeline_mode = #tpu.pipeline_mode<synchronous>, transform_indices = @transform_1, window_bounds = array<i64: 320, 1024>}, {pipeline_mode = #tpu.pipeline_mode<synchronous>, transform_indices = @transform_2, window_bounds = array<i64: 1, 1024>}, {transform_indices = @transform_3, window_bounds = array<i64: 1, 1024>}]} {
    %c0 = arith.constant 0 : index
    %c0_0 = arith.constant 0 : index
    %0 = vector.load %arg1[%c0, %c0_0] : memref<1x320xf32, #tpu.memory_space<vmem>>, vector<1x320xf32>
    %c0_1 = arith.constant 0 : index
    %c0_2 = arith.constant 0 : index
    %1 = vector.load %arg2[%c0_1, %c0_2] : memref<320x1024xf32, #tpu.memory_space<vmem>>, vector<320x1024xf32>
    %cst = arith.constant dense<0.000000e+00> : vector<1x1024xf32>
    %2 = tpu.matmul %0, %1, %cst {dimension_numbers = #tpu.dot_dimension_numbers<[1], [0], [0], [1], [0, 0, 1, 1], [], []>} : vector<1x320xf32>, vector<320x1024xf32>, vector<1x1024xf32> -> vector<1x1024xf32>
    %c0_3 = arith.constant 0 : index
    %c0_4 = arith.constant 0 : index
    %3 = vector.load %arg3[%c0_3, %c0_4] : memref<1x1024xf32, #tpu.memory_space<vmem>>, vector<1x1024xf32>
    %4 = arith.addf %2, %3 : vector<1x1024xf32>
    %cst_5 = arith.constant 0.000000e+00 : f32
    %5 = vector.broadcast %cst_5 : f32 to vector<1x1024xf32>
    %6 = arith.maximumf %4, %5 : vector<1x1024xf32>
    %7 = arith.negf %6 : vector<1x1024xf32>
    %8 = math.exp %7 : vector<1x1024xf32>
    %cst_6 = arith.constant 1.000000e+00 : f32
    %9 = vector.broadcast %cst_6 : f32 to vector<1x1024xf32>
    %10 = arith.addf %9, %8 : vector<1x1024xf32>
    %11 = arith.divf %9, %10 : vector<1x1024xf32>
    %12 = math.tanh %11 : vector<1x1024xf32>
    %13 = math.tanh %12 : vector<1x1024xf32>
    %c0_7 = arith.constant 0 : index
    %c0_8 = arith.constant 0 : index
    %14 = vector.load %arg4[%c0_7, %c0_8] : memref<1x1024xf32, #tpu.memory_space<vmem>>, vector<1x1024xf32>
    tpu.vector_store %arg4[%c0_7, %c0_8], %13 {strides = array<i32>} : memref<1x1024xf32, #tpu.memory_space<vmem>>, vector<1x1024xf32>,
    return
  }
  func.func @transform_0(%arg0: i32) -> (i32, i32) {
    %c0_i32 = arith.constant 0 : i32
    %c0_i32_0 = arith.constant 0 : i32
    return %arg0, %c0_i32 : i32, i32
  }
  func.func @transform_1(%arg0: i32) -> (i32, i32) {
    %c0_i32 = arith.constant 0 : i32
    %c0_i32_0 = arith.constant 0 : i32
    %c0_i32_1 = arith.constant 0 : i32
    return %c0_i32, %c0_i32_0 : i32, i32
  }
  func.func @transform_2(%arg0: i32) -> (i32, i32) {
    %c0_i32 = arith.constant 0 : i32
    %c0_i32_0 = arith.constant 0 : i32
    %c0_i32_1 = arith.constant 0 : i32
    return %c0_i32, %c0_i32_0 : i32, i32
  }
  func.func @transform_3(%arg0: i32) -> (i32, i32) {
    %c0_i32 = arith.constant 0 : i32
    %c0_i32_0 = arith.constant 0 : i32
    return %arg0, %c0_i32 : i32, i32
  }
}

</mosaic_0001>

<bundles_post_ra>
// kernel: forward.1
= control target key start
LH: loop header
LB: loop body
LE: loop exit
PB: predicated region body
PF: predicated region fallthrough
CT: control target
= control target key end

     0   :  { %8 = vsyncpa [#allocation3], 0  ;;  %s1775_s0 = inlined_call_operand.vmem [shape: f32[1,320], index: 0, kind: input, shape index: {}]   ;;  %s1776_s1 = inlined_call_operand.hbm [shape: f32[320,1024], index: 1, kind: input, shape index: {}]   ;;  %s1777_s2 = inlined_call_operand.hbm [shape: f32[1,1024], index: 2, kind: input, shape index: {}]   ;;  %s1778_s3 = inlined_call_operand.hbm [shape: f32[1,1024], index: 3, kind: output, shape index: {}]  }
   0x1   :  { %9 = vsyncpa [#allocation6], 0 }
   0x2   :  { %10 = vsyncpa [#allocation4], 0  ;;  %s1628_s12 = smov [#allocation2]   ;;  %s1556_s16 = scalar_lea.hbm %s1776_s1, 40960 }
   0x3   :  { %s18_s13 = sshll.u32 %s1628_s12, 4  ;;  %p1557_p0 = scmp.ne.s32.totalorder %s1776_s1, %s1556_s16  ;;  %s19_s13 = int_to_ptr.vmem [resolvable:$true] %s18_s13 }
   0x4   :  { %p1560_p1 = scmp.lt.u32.totalorder %s1556_s16, %s1776_s1 }
   0x6   :  { %p1562_p2 = pnand %p1560_p1, %p1557_p0 }
   0x8   :  { %1565 = shalt.err (!%p1562_p2)
}
   0x9   :  { %s1566_s21 = scalar_lea.vmem %s19_s13, 40960  ;;  %p1571_p4 = scmp.lt.s32.totalorder %s19_s13, %s19_s13 }
   0xa   :  { %p1567_p3 = scmp.ne.s32.totalorder %s19_s13, %s1566_s21  ;;  %p1572_p5 = scmp.lt.s32.totalorder %s1566_s21, %s1566_s21 }
   0xc   :  { %p1573_p6 = por %p1572_p5, %p1571_p4 }
   0xe   :  { %p1574_p7 = pnand %p1573_p6, %p1567_p3 }
  0x10   :  { %1577 = shalt.err (!%p1574_p7)
}
  0x11   :  { %s1629_s22 = smov 1024   ;;  %s1630_s23 = smov 64  }
  0x12   :  { %24 = dma.hbm_to_vmem [thread:$0]  %s1776_s1, 40960, %s19_s13, [#allocation3], %s1629_s22, %s1629_s22, %s1630_s23  }
  0x13   :  { %s1631_s26 = smov [#allocation5]   ;;  %s1578_s30 = scalar_lea.hbm %s1777_s2, 128 }
  0x14   :  { %s31_s27 = sshll.u32 %s1631_s26, 4  ;;  %p1579_p8 = scmp.ne.s32.totalorder %s1777_s2, %s1578_s30  ;;  %s32_s27 = int_to_ptr.vmem [resolvable:$true] %s31_s27 }
  0x15   :  { %p1582_p9 = scmp.lt.u32.totalorder %s1578_s30, %s1777_s2 }
  0x17   :  { %p1584_p10 = pnand %p1582_p9, %p1579_p8 }
  0x19   :  { %1587 = shalt.err (!%p1584_p10)
}
  0x1a   :  { %s1588_s8 = scalar_lea.vmem %s32_s27, 128  ;;  %p1593_p12 = scmp.lt.s32.totalorder %s32_s27, %s32_s27 }
  0x1b   :  { %p1589_p11 = scmp.ne.s32.totalorder %s32_s27, %s1588_s8  ;;  %p1594_p13 = scmp.lt.s32.totalorder %s1588_s8, %s1588_s8 }
  0x1d   :  { %p1595_p0 = por %p1594_p13, %p1593_p12 }
  0x1f   :  { %p1596_p1 = pnand %p1595_p0, %p1589_p11 }
  0x21   :  { %1599 = shalt.err (!%p1596_p1)
}
  0x22   :  { %34 = dma.hbm_to_vmem [thread:$0]  %s1777_s2, 128, %s32_s27, [#allocation6]  }
  0x23   :  { %1622 = dma.done.wait [#allocation3], 40960  }
  0x24   :  { %1623 = vsyncadd [#allocation3], 4294926336 }
  0x25   :  { %1624 = dma.done.wait [#allocation6], 128  }
  0x26   :  { %1625 = vsyncadd [#allocation6], 4294967168  ;;  %v43_v0 = vld [vmem:[#allocation2 + $0x8] sm:$0xff]  ;;  %v45_v2 = vld [vmem:[#allocation2 + $0x18] sm:$0xff]  ;;  %vm419_vm0 = vcmask 523264  }
  0x27   :  { %v51_v1 = vld [vmem:[#allocation2 + $0x48] sm:$0xff]  ;;  %v53_v4 = vld [vmem:[#allocation2 + $0x58] sm:$0xff]  ;;  %v42_v5 = vld [vmem:[#allocation2] sm:$0xff] }
  0x28   :  { %v1149_v3 = vpack.c.bf16 %v51_v1, %v43_v0  ;;  %v50_v6 = vld [vmem:[#allocation2 + $0x40] sm:$0xff]  ;;  %v1229_v7 = vpack.c.bf16 %v53_v4, %v45_v2  ;;  %v44_v9 = vld [vmem:[#allocation2 + $0x10] sm:$0xff]  ;;  %v59_v11 = vld [vmem:[#allocation2 + $0x88] sm:$0xff] }
  0x29   :  { %v1151_v8 = vpack.c.bf16 %v50_v6, %v42_v5  ;;  %v52_v10 = vld [vmem:[#allocation2 + $0x50] sm:$0xff]  ;;  %v67_v13 = vld [vmem:[#allocation2 + $0xc8] sm:$0xff]  ;;  %v61_v14 = vld [vmem:[#allocation2 + $0x98] sm:$0xff] }
  0x2a   :  { %1150 = vmatprep.subr.bf16.mxu0 %v1149_v3  ;;  %v1231_v12 = vpack.c.bf16 %v52_v10, %v44_v9  ;;  %v69_v15 = vld [vmem:[#allocation2 + $0xd8] sm:$0xff]  ;;  %1230 = vmatprep.subr.bf16.mxu1 %v1229_v7  ;;  %v1153_v16 = vpack.c.bf16 %v67_v13, %v59_v11  ;;  %v58_v18 = vld [vmem:[#allocation2 + $0x80] sm:$0xff]  ;;  %v60_v20 = vld [vmem:[#allocation2 + $0x90] sm:$0xff] }
  0x2b   :  { %1152 = vmatpush1.bf16.msra.mxu0 %v1151_v8  ;;  %v1233_v17 = vpack.c.bf16 %v69_v15, %v61_v14  ;;  %v66_v19 = vld [vmem:[#allocation2 + $0xc0] sm:$0xff]  ;;  %v68_v22 = vld [vmem:[#allocation2 + $0xd0] sm:$0xff]  ;;  %v75_v23 = vld [vmem:[#allocation2 + $0x108] sm:$0xff] }
  0x2c   :  { %1232 = vmatpush1.bf16.msra.mxu1 %v1231_v12  ;;  %v1155_v21 = vpack.c.bf16 %v66_v19, %v58_v18  ;;  %v83_v24 = vld [vmem:[#allocation2 + $0x148] sm:$0xff]  ;;  %1154 = vmatprep.subr.bf16.mxu0 %v1153_v16  ;;  %v1235_v25 = vpack.c.bf16 %v68_v22, %v60_v20  ;;  %v77_v27 = vld [vmem:[#allocation2 + $0x118] sm:$0xff]  ;;  %v74_v29 = vld [vmem:[#allocation2 + $0x100] sm:$0xff] }
  0x2d   :  { %1234 = vmatprep.subr.bf16.mxu1 %v1233_v17  ;;  %v1157_v26 = vpack.c.bf16 %v83_v24, %v75_v23  ;;  %v85_v28 = vld [vmem:[#allocation2 + $0x158] sm:$0xff]  ;;  %v82_v31 = vld [vmem:[#allocation2 + $0x140] sm:$0xff]  ;;  %v76_v32 = vld [vmem:[#allocation2 + $0x110] sm:$0xff] }
  0x2e   :  { %v1237_v30 = vpack.c.bf16 %v85_v28, %v77_v27  ;;  %v84_v33 = vld [vmem:[#allocation2 + $0x150] sm:$0xff]  ;;  %v1159_v34 = vpack.c.bf16 %v82_v31, %v74_v29  ;;  %v91_v35 = vld [vmem:[#allocation2 + $0x188] sm:$0xff]  ;;  %v93_v37 = vld [vmem:[#allocation2 + $0x198] sm:$0xff] }
  0x2f   :  { %1156 = vmatpush1.bf16.msra.mxu0 %v1155_v21  ;;  %v99_v36 = vld [vmem:[#allocation2 + $0x1c8] sm:$0xff]  ;;  %v1239_v38 = vpack.c.bf16 %v84_v33, %v76_v32  ;;  %v101_v40 = vld [vmem:[#allocation2 + $0x1d8] sm:$0xff]  ;;  %v90_v41 = vld [vmem:[#allocation2 + $0x180] sm:$0xff] }
  0x30   :  { %1236 = vmatpush1.bf16.msra.mxu1 %v1235_v25  ;;  %1158 = vmatprep.subr.bf16.mxu0 %v1157_v26  ;;  %v1161_v39 = vpack.c.bf16 %v99_v36, %v91_v35  ;;  %v98_v42 = vld [vmem:[#allocation2 + $0x1c0] sm:$0xff]  ;;  %v1241_v43 = vpack.c.bf16 %v101_v40, %v93_v37  ;;  %v92_v44 = vld [vmem:[#allocation2 + $0x190] sm:$0xff]  ;;  %v107_v46 = vld [vmem:[#allocation2 + $0x208] sm:$0xff] }
  0x31   :  { %1238 = vmatprep.subr.bf16.mxu1 %v1237_v30  ;;  %v100_v45 = vld [vmem:[#allocation2 + $0x1d0] sm:$0xff]  ;;  %v115_v47 = vld [vmem:[#allocation2 + $0x248] sm:$0xff]  ;;  %v109_v48 = vld [vmem:[#allocation2 + $0x218] sm:$0xff]  ;;  %v1163_v50 = vpack.c.bf16 %v98_v42, %v90_v41 }
  0x32   :  { %v117_v49 = vld [vmem:[#allocation2 + $0x258] sm:$0xff]  ;;  %v1243_v51 = vpack.c.bf16 %v100_v45, %v92_v44  ;;  %v1165_v52 = vpack.c.bf16 %v115_v47, %v107_v46  ;;  %v106_v53 = vld [vmem:[#allocation2 + $0x200] sm:$0xff]  ;;  %v108_v55 = vld [vmem:[#allocation2 + $0x210] sm:$0xff]  ;;  %v364_v46 = vlaneseq }
  0x33   :  { %1160 = vmatpush1.bf16.msra.mxu0 %v1159_v34  ;;  %v114_v54 = vld [vmem:[#allocation2 + $0x240] sm:$0xff]  ;;  %v1245_v56 = vpack.c.bf16 %v117_v49, %v109_v48  ;;  %v116_v57 = vld [vmem:[#allocation2 + $0x250] sm:$0xff]  ;;  %v123_v58 = vld [vmem:[#allocation2 + $0x288] sm:$0xff] }
  0x34   :  { %1240 = vmatpush1.bf16.msra.mxu1 %v1239_v38  ;;  %1162 = vmatprep.subr.bf16.mxu0 %v1161_v39  ;;  %v131_v59 = vld [vmem:[#allocation2 + $0x2c8] sm:$0xff]  ;;  %v125_v60 = vld [vmem:[#allocation2 + $0x298] sm:$0xff]  ;;  %v1167_v62 = vpack.c.bf16 %v114_v54, %v106_v53  ;;  %v1247_v63 = vpack.c.bf16 %v116_v57, %v108_v55  ;;  %v122_v1 = vld [vmem:[#allocation2 + $0x280] sm:$0xff] }
  0x35   :  { %1242 = vmatprep.subr.bf16.mxu1 %v1241_v43  ;;  %v133_v61 = vld [vmem:[#allocation2 + $0x2d8] sm:$0xff]  ;;  %v1169_v0 = vpack.c.bf16 %v131_v59, %v123_v58  ;;  %v130_v2 = vld [vmem:[#allocation2 + $0x2c0] sm:$0xff]  ;;  %v124_v3 = vld [vmem:[#allocation2 + $0x290] sm:$0xff]  ;;  %v1679_v59 = vshrl.u32 %v364_v46, 7 }
  0x36   :  { %v1249_v4 = vpack.c.bf16 %v133_v61, %v125_v60  ;;  %v132_v5 = vld [vmem:[#allocation2 + $0x2d0] sm:$0xff]  ;;  %v139_v6 = vld [vmem:[#allocation2 + $0x308] sm:$0xff]  ;;  %v141_v8 = vld [vmem:[#allocation2 + $0x318] sm:$0xff]  ;;  %v1171_v10 = vpack.c.bf16 %v130_v2, %v122_v1 }
  0x37   :  { %1164 = vmatpush1.bf16.msra.mxu0 %v1163_v50  ;;  %v147_v7 = vld [vmem:[#allocation2 + $0x348] sm:$0xff]  ;;  %v149_v9 = vld [vmem:[#allocation2 + $0x358] sm:$0xff]  ;;  %v1251_v11 = vpack.c.bf16 %v132_v5, %v124_v3  ;;  %v138_v13 = vld [vmem:[#allocation2 + $0x300] sm:$0xff] }
  0x38   :  { %1244 = vmatpush1.bf16.msra.mxu1 %v1243_v51  ;;  %1166 = vmatprep.subr.bf16.mxu0 %v1165_v52  ;;  %v1173_v12 = vpack.c.bf16 %v147_v7, %v139_v6  ;;  %v146_v14 = vld [vmem:[#allocation2 + $0x340] sm:$0xff]  ;;  %v140_v15 = vld [vmem:[#allocation2 + $0x310] sm:$0xff]  ;;  %v1253_v16 = vpack.c.bf16 %v149_v9, %v141_v8  ;;  %v155_v18 = vld [vmem:[#allocation2 + $0x388] sm:$0xff]  ;;  %v370_v8 = vsub.s32 1, %v1679_v59 }
  0x39   :  { %1246 = vmatprep.subr.bf16.mxu1 %v1245_v56  ;;  %v148_v17 = vld [vmem:[#allocation2 + $0x350] sm:$0xff]  ;;  %v163_v19 = vld [vmem:[#allocation2 + $0x3c8] sm:$0xff]  ;;  %v157_v20 = vld [vmem:[#allocation2 + $0x398] sm:$0xff]  ;;  %v1175_v22 = vpack.c.bf16 %v146_v14, %v138_v13 }
  0x3a   :  { %v165_v21 = vld [vmem:[#allocation2 + $0x3d8] sm:$0xff]  ;;  %v1255_v23 = vpack.c.bf16 %v148_v17, %v140_v15  ;;  %v1177_v24 = vpack.c.bf16 %v163_v19, %v155_v18  ;;  %v154_v25 = vld [vmem:[#allocation2 + $0x380] sm:$0xff]  ;;  %v156_v27 = vld [vmem:[#allocation2 + $0x390] sm:$0xff] }
  0x3b   :  { %1168 = vmatpush1.bf16.msra.mxu0 %v1167_v62  ;;  %v162_v26 = vld [vmem:[#allocation2 + $0x3c0] sm:$0xff]  ;;  %v1257_v28 = vpack.c.bf16 %v165_v21, %v157_v20  ;;  %v164_v29 = vld [vmem:[#allocation2 + $0x3d0] sm:$0xff]  ;;  %v171_v30 = vld [vmem:[#allocation2 + $0x408] sm:$0xff] }
  0x3c   :  { %1248 = vmatpush1.bf16.msra.mxu1 %v1247_v63  ;;  %1170 = vmatprep.subr.bf16.mxu0 %v1169_v0  ;;  %v179_v31 = vld [vmem:[#allocation2 + $0x448] sm:$0xff]  ;;  %v173_v32 = vld [vmem:[#allocation2 + $0x418] sm:$0xff]  ;;  %v1179_v34 = vpack.c.bf16 %v162_v26, %v154_v25  ;;  %v1259_v35 = vpack.c.bf16 %v164_v29, %v156_v27  ;;  %v170_v37 = vld [vmem:[#allocation2 + $0x400] sm:$0xff] }
  0x3d   :  { %1250 = vmatprep.subr.bf16.mxu1 %v1249_v4  ;;  %v181_v33 = vld [vmem:[#allocation2 + $0x458] sm:$0xff]  ;;  %v1181_v36 = vpack.c.bf16 %v179_v31, %v171_v30  ;;  %v178_v38 = vld [vmem:[#allocation2 + $0x440] sm:$0xff]  ;;  %v172_v39 = vld [vmem:[#allocation2 + $0x410] sm:$0xff] }
  0x3e   :  { %v1261_v40 = vpack.c.bf16 %v181_v33, %v173_v32  ;;  %v180_v41 = vld [vmem:[#allocation2 + $0x450] sm:$0xff]  ;;  %v187_v42 = vld [vmem:[#allocation2 + $0x488] sm:$0xff]  ;;  %v189_v44 = vld [vmem:[#allocation2 + $0x498] sm:$0xff]  ;;  %v1183_v47 = vpack.c.bf16 %v178_v38, %v170_v37 }
  0x3f   :  { %1172 = vmatpush1.bf16.msra.mxu0 %v1171_v10  ;;  %v195_v43 = vld [vmem:[#allocation2 + $0x4c8] sm:$0xff]  ;;  %v197_v45 = vld [vmem:[#allocation2 + $0x4d8] sm:$0xff]  ;;  %v1263_v48 = vpack.c.bf16 %v180_v41, %v172_v39  ;;  %v186_v50 = vld [vmem:[#allocation2 + $0x480] sm:$0xff] }
  0x40   :  { %1252 = vmatpush1.bf16.msra.mxu1 %v1251_v11  ;;  %1174 = vmatprep.subr.bf16.mxu0 %v1173_v12  ;;  %v1185_v49 = vpack.c.bf16 %v195_v43, %v187_v42  ;;  %v194_v51 = vld [vmem:[#allocation2 + $0x4c0] sm:$0xff]  ;;  %v188_v52 = vld [vmem:[#allocation2 + $0x490] sm:$0xff]  ;;  %v1265_v53 = vpack.c.bf16 %v197_v45, %v189_v44  ;;  %v203_v55 = vld [vmem:[#allocation2 + $0x508] sm:$0xff] }
  0x41   :  { %1254 = vmatprep.subr.bf16.mxu1 %v1253_v16  ;;  %v196_v54 = vld [vmem:[#allocation2 + $0x4d0] sm:$0xff]  ;;  %v211_v56 = vld [vmem:[#allocation2 + $0x548] sm:$0xff]  ;;  %v205_v57 = vld [vmem:[#allocation2 + $0x518] sm:$0xff]  ;;  %v1187_v60 = vpack.c.bf16 %v194_v51, %v186_v50 }
  0x42   :  { %v213_v58 = vld [vmem:[#allocation2 + $0x558] sm:$0xff]  ;;  %v1267_v61 = vpack.c.bf16 %v196_v54, %v188_v52  ;;  %v1189_v62 = vpack.c.bf16 %v211_v56, %v203_v55  ;;  %v202_v63 = vld [vmem:[#allocation2 + $0x500] sm:$0xff]  ;;  %v204_v1 = vld [vmem:[#allocation2 + $0x510] sm:$0xff] }
  0x43   :  { %1176 = vmatpush1.bf16.msra.mxu0 %v1175_v22  ;;  %v210_v0 = vld [vmem:[#allocation2 + $0x540] sm:$0xff]  ;;  %v1269_v2 = vpack.c.bf16 %v213_v58, %v205_v57  ;;  %v212_v3 = vld [vmem:[#allocation2 + $0x550] sm:$0xff]  ;;  %v219_v4 = vld [vmem:[#allocation2 + $0x588] sm:$0xff] }
  0x44   :  { %1256 = vmatpush1.bf16.msra.mxu1 %v1255_v23  ;;  %1178 = vmatprep.subr.bf16.mxu0 %v1177_v24  ;;  %v227_v5 = vld [vmem:[#allocation2 + $0x5c8] sm:$0xff]  ;;  %v221_v6 = vld [vmem:[#allocation2 + $0x598] sm:$0xff]  ;;  %v1191_v9 = vpack.c.bf16 %v210_v0, %v202_v63  ;;  %v218_v10 = vld [vmem:[#allocation2 + $0x580] sm:$0xff]  ;;  %v1271_v11 = vpack.c.bf16 %v212_v3, %v204_v1 }
  0x45   :  { %1258 = vmatprep.subr.bf16.mxu1 %v1257_v28  ;;  %v229_v7 = vld [vmem:[#allocation2 + $0x5d8] sm:$0xff]  ;;  %v1193_v12 = vpack.c.bf16 %v227_v5, %v219_v4  ;;  %v226_v13 = vld [vmem:[#allocation2 + $0x5c0] sm:$0xff]  ;;  %v220_v14 = vld [vmem:[#allocation2 + $0x590] sm:$0xff] }
  0x46   :  { %v228_v15 = vld [vmem:[#allocation2 + $0x5d0] sm:$0xff]  ;;  %v1273_v16 = vpack.c.bf16 %v229_v7, %v221_v6  ;;  %v235_v17 = vld [vmem:[#allocation2 + $0x608] sm:$0xff]  ;;  %v1685_v19 = vld [vmem:[%s1775_s0] sm:$0x7]  ;;  %v1195_v23 = vpack.c.bf16 %v226_v13, %v218_v10  ;;  %s1634_s0 = smov [#allocation7]  }
  0x47   :  { %1180 = vmatpush1.bf16.msra.mxu0 %v1179_v34  ;;  %v243_v18 = vld [vmem:[#allocation2 + $0x648] sm:$0xff]  ;;  %v237_v20 = vld [vmem:[#allocation2 + $0x618] sm:$0xff]  ;;  %v1690_v22 = vrot.slane %v1685_v19, %v370_v8  ;;  %v1275_v24 = vpack.c.bf16 %v228_v15, %v220_v14  ;;  %v234_v26 = vld [vmem:[#allocation2 + $0x600] sm:$0xff]  ;;  %s1127_s11 = sshll.u32 %s1634_s0, 4  ;;  %s1128_s11 = int_to_ptr.vmem [resolvable:$true] %s1127_s11 }
  0x48   :  { %1260 = vmatpush1.bf16.msra.mxu1 %v1259_v35  ;;  %1182 = vmatprep.subr.bf16.mxu0 %v1181_v36  ;;  %v245_v21 = vld [vmem:[#allocation2 + $0x658] sm:$0xff]  ;;  %v1197_v25 = vpack.c.bf16 %v243_v18, %v235_v17  ;;  %v242_v27 = vld [vmem:[#allocation2 + $0x640] sm:$0xff]  ;;  %v236_v28 = vld [vmem:[#allocation2 + $0x610] sm:$0xff]  ;;  %s1600_s12 = scalar_lea.vmem %s1128_s11, 128  ;;  %p1605_p3 = scmp.lt.s32.totalorder %s1128_s11, %s1128_s11 }
  0x49   :  { %1262 = vmatprep.subr.bf16.mxu1 %v1261_v40  ;;  %v1277_v29 = vpack.c.bf16 %v245_v21, %v237_v20  ;;  %v244_v30 = vld [vmem:[#allocation2 + $0x650] sm:$0xff]  ;;  %v251_v31 = vld [vmem:[#allocation2 + $0x688] sm:$0xff]  ;;  %486 = vmatprep.mubr.f32.mxu0 %v1690_v22  ;;  %v253_v33 = vld [vmem:[#allocation2 + $0x698] sm:$0xff]  ;;  %v1199_v35 = vpack.c.bf16 %v242_v27, %v234_v26  ;;  %p1601_p2 = scmp.ne.s32.totalorder %s1128_s11, %s1600_s12  ;;  %p1606_p4 = scmp.lt.s32.totalorder %s1600_s12, %s1600_s12 }
  0x4a   :  { %v259_v32 = vld [vmem:[#allocation2 + $0x6c8] sm:$0xff]  ;;  %v261_v34 = vld [vmem:[#allocation2 + $0x6d8] sm:$0xff]  ;;  %628 = vmatprep.mubr.f32.mxu1 %v1690_v22  ;;  %v1279_v36 = vpack.c.bf16 %v244_v30, %v236_v28  ;;  %v250_v38 = vld [vmem:[#allocation2 + $0x680] sm:$0xff] }
  0x4b   :  { %1184 = vmatpush1.bf16.msra.mxu0 %v1183_v47  ;;  %v1201_v37 = vpack.c.bf16 %v259_v32, %v251_v31  ;;  %v258_v39 = vld [vmem:[#allocation2 + $0x6c0] sm:$0xff]  ;;  %v252_v40 = vld [vmem:[#allocation2 + $0x690] sm:$0xff]  ;;  %v1281_v41 = vpack.c.bf16 %v261_v34, %v253_v33  ;;  %v267_v43 = vld [vmem:[#allocation2 + $0x708] sm:$0xff]  ;;  %p1607_p5 = por %p1606_p4, %p1605_p3 }
  0x4c   :  { %1264 = vmatpush1.bf16.msra.mxu1 %v1263_v48  ;;  %1186 = vmatprep.subr.bf16.mxu0 %v1185_v49  ;;  %v260_v42 = vld [vmem:[#allocation2 + $0x6d0] sm:$0xff]  ;;  %v275_v44 = vld [vmem:[#allocation2 + $0x748] sm:$0xff]  ;;  %v269_v45 = vld [vmem:[#allocation2 + $0x718] sm:$0xff]  ;;  %v1203_v47 = vpack.c.bf16 %v258_v39, %v250_v38 }
  0x4d   :  { %1266 = vmatprep.subr.bf16.mxu1 %v1265_v53  ;;  %v277_v46 = vld [vmem:[#allocation2 + $0x758] sm:$0xff]  ;;  %v1283_v48 = vpack.c.bf16 %v260_v42, %v252_v40  ;;  %v1205_v49 = vpack.c.bf16 %v275_v44, %v267_v43  ;;  %v266_v50 = vld [vmem:[#allocation2 + $0x700] sm:$0xff]  ;;  %v268_v52 = vld [vmem:[#allocation2 + $0x710] sm:$0xff]  ;;  %p1608_p6 = pnand %p1607_p5, %p1601_p2 }
  0x4e   :  { %v274_v51 = vld [vmem:[#allocation2 + $0x740] sm:$0xff]  ;;  %v1285_v53 = vpack.c.bf16 %v277_v46, %v269_v45  ;;  %v276_v54 = vld [vmem:[#allocation2 + $0x750] sm:$0xff]  ;;  %v283_v55 = vld [vmem:[#allocation2 + $0x788] sm:$0xff] }
  0x4f   :  { %1188 = vmatpush1.bf16.msra.mxu0 %v1187_v60  ;;  %v291_v56 = vld [vmem:[#allocation2 + $0x7c8] sm:$0xff]  ;;  %v285_v57 = vld [vmem:[#allocation2 + $0x798] sm:$0xff]  ;;  %v1207_v60 = vpack.c.bf16 %v274_v51, %v266_v50  ;;  %v282_v63 = vld [vmem:[#allocation2 + $0x780] sm:$0xff] }
  0x50   :  { %1268 = vmatpush1.bf16.msra.mxu1 %v1267_v61  ;;  %1190 = vmatprep.subr.bf16.mxu0 %v1189_v62  ;;  %v293_v58 = vld [vmem:[#allocation2 + $0x7d8] sm:$0xff]  ;;  %v1287_v61 = vpack.c.bf16 %v276_v54, %v268_v52  ;;  %v1209_v62 = vpack.c.bf16 %v291_v56, %v283_v55  ;;  %v290_v0 = vld [vmem:[#allocation2 + $0x7c0] sm:$0xff]  ;;  %v284_v1 = vld [vmem:[#allocation2 + $0x790] sm:$0xff] }
  0x51   :  { %1270 = vmatprep.subr.bf16.mxu1 %v1269_v2  ;;  %v1289_v2 = vpack.c.bf16 %v293_v58, %v285_v57  ;;  %v292_v3 = vld [vmem:[#allocation2 + $0x7d0] sm:$0xff]  ;;  %v299_v4 = vld [vmem:[#allocation2 + $0x808] sm:$0xff]  ;;  %v301_v6 = vld [vmem:[#allocation2 + $0x818] sm:$0xff]  ;;  %v1211_v10 = vpack.c.bf16 %v290_v0, %v282_v63 }
  0x52   :  { %v307_v5 = vld [vmem:[#allocation2 + $0x848] sm:$0xff]  ;;  %v309_v7 = vld [vmem:[#allocation2 + $0x858] sm:$0xff]  ;;  %v298_v13 = vld [vmem:[#allocation2 + $0x800] sm:$0xff] }
  0x53   :  { %1192 = vmatpush1.bf16.msra.mxu0 %v1191_v9  ;;  %v366_v9 = vsub.s32 0, %v1679_v59  ;;  %v306_v14 = vld [vmem:[#allocation2 + $0x840] sm:$0xff]  ;;  %v300_v15 = vld [vmem:[#allocation2 + $0x810] sm:$0xff]  ;;  %v315_v18 = vld [vmem:[#allocation2 + $0x888] sm:$0xff] }
  0x54   :  { %1272 = vmatpush1.bf16.msra.mxu1 %v1271_v11  ;;  %1194 = vmatprep.subr.bf16.mxu0 %v1193_v12  ;;  %v1291_v11 = vpack.c.bf16 %v292_v3, %v284_v1  ;;  %v1213_v12 = vpack.c.bf16 %v307_v5, %v299_v4  ;;  %v308_v17 = vld [vmem:[#allocation2 + $0x850] sm:$0xff]  ;;  %v323_v20 = vld [vmem:[#allocation2 + $0x8c8] sm:$0xff]  ;;  %v314_v28 = vld [vmem:[#allocation2 + $0x880] sm:$0xff] }
  0x55   :  { %1274 = vmatprep.subr.bf16.mxu1 %v1273_v16  ;;  %v1293_v16 = vpack.c.bf16 %v309_v7, %v301_v6  ;;  %v1698_v21 = vrot.slane %v1685_v19, %v366_v9  ;;  %v1295_v26 = vpack.c.bf16 %v308_v17, %v300_v15  ;;  %v1217_v27 = vpack.c.bf16 %v323_v20, %v315_v18  ;;  %v316_v30 = vld [vmem:[#allocation2 + $0x890] sm:$0xff]  ;;  %v331_v33 = vld [vmem:[#allocation2 + $0x908] sm:$0xff]  ;;  %v330_v40 = vld [vmem:[#allocation2 + $0x900] sm:$0xff] }
  0x56   :  { %v324_v32 = vld [vmem:[#allocation2 + $0x8d0] sm:$0xff]  ;;  %v339_v34 = vld [vmem:[#allocation2 + $0x948] sm:$0xff]  ;;  %v354_v54 = vld [vmem:[#allocation2 + $0x9c0] sm:$0xff] }
  0x57   :  { %1196 = vmatpush1.bf16.msra.mxu0 %v1195_v23  ;;  %v317_v23 = vld [vmem:[#allocation2 + $0x898] sm:$0xff]  ;;  %v1299_v38 = vpack.c.bf16 %v324_v32, %v316_v30  ;;  %v1221_v39 = vpack.c.bf16 %v339_v34, %v331_v33  ;;  %v332_v42 = vld [vmem:[#allocation2 + $0x910] sm:$0xff]  ;;  %v347_v45 = vld [vmem:[#allocation2 + $0x988] sm:$0xff] }
  0x58   :  { %1276 = vmatpush1.bf16.msra.mxu1 %v1275_v24  ;;  %1198 = vmatprep.subr.bf16.mxu0 %v1197_v25  ;;  %v325_v24 = vld [vmem:[#allocation2 + $0x8d8] sm:$0xff]  ;;  %v1215_v25 = vpack.c.bf16 %v306_v14, %v298_v13  ;;  %v340_v44 = vld [vmem:[#allocation2 + $0x950] sm:$0xff]  ;;  %v355_v46 = vld [vmem:[#allocation2 + $0x9c8] sm:$0xff] }
  0x59   :  { %1278 = vmatprep.subr.bf16.mxu1 %v1277_v29  ;;  %v322_v29 = vld [vmem:[#allocation2 + $0x8c0] sm:$0xff]  ;;  %v1297_v31 = vpack.c.bf16 %v325_v24, %v317_v23  ;;  %v1303_v51 = vpack.c.bf16 %v340_v44, %v332_v42  ;;  %v1225_v52 = vpack.c.bf16 %v355_v46, %v347_v45  ;;  %v348_v55 = vld [vmem:[#allocation2 + $0x990] sm:$0xff]  ;;  %v47_v58 = vld [vmem:[#allocation2 + $0x28] sm:$0xff] }
  0x5a   :  { %v356_v57 = vld [vmem:[#allocation2 + $0x9d0] sm:$0xff]  ;;  %v57_v63 = vld [vmem:[#allocation2 + $0x78] sm:$0xff]  ;;  %v46_v3 = vld [vmem:[#allocation2 + $0x20] sm:$0xff] }
  0x5b   :  { %1200 = vmatpush1.bf16.msra.mxu0 %v1199_v35  ;;  %v333_v35 = vld [vmem:[#allocation2 + $0x918] sm:$0xff]  ;;  %v1307_v1 = vpack.c.bf16 %v356_v57, %v348_v55  ;;  %v54_v4 = vld [vmem:[#allocation2 + $0x60] sm:$0xff]  ;;  %v48_v5 = vld [vmem:[#allocation2 + $0x30] sm:$0xff] }
  0x5c   :  { %1280 = vmatpush1.bf16.msra.mxu1 %v1279_v36  ;;  %1202 = vmatprep.subr.bf16.mxu0 %v1201_v37  ;;  %v341_v36 = vld [vmem:[#allocation2 + $0x958] sm:$0xff]  ;;  %v1219_v37 = vpack.c.bf16 %v322_v29, %v314_v28  ;;  %v56_v7 = vld [vmem:[#allocation2 + $0x70] sm:$0xff]  ;;  %v1311_v15 = vpack.c.bf16 %v54_v4, %v46_v3  ;;  %v62_v18 = vld [vmem:[#allocation2 + $0xa0] sm:$0xff] }
  0x5d   :  { %1282 = vmatprep.subr.bf16.mxu1 %v1281_v41  ;;  %v338_v41 = vld [vmem:[#allocation2 + $0x940] sm:$0xff]  ;;  %v1301_v43 = vpack.c.bf16 %v341_v36, %v333_v35  ;;  %v65_v13 = vld [vmem:[#allocation2 + $0xb8] sm:$0xff]  ;;  %v64_v23 = vld [vmem:[#allocation2 + $0xb0] sm:$0xff] }
  0x5e   :  { %v1223_v50 = vpack.c.bf16 %v338_v41, %v330_v40  ;;  %v73_v14 = vld [vmem:[#allocation2 + $0xf8] sm:$0xff]  ;;  %v70_v20 = vld [vmem:[#allocation2 + $0xe0] sm:$0xff]  ;;  %v80_v34 = vld [vmem:[#allocation2 + $0x130] sm:$0xff] }
  0x5f   :  { %1204 = vmatpush1.bf16.msra.mxu0 %v1203_v47  ;;  %v1632_v47 = vmov 0.0   ;;  %v1393_v24 = vpack.c.bf16 %v73_v14, %v65_v13  ;;  %v89_v28 = vld [vmem:[#allocation2 + $0x178] sm:$0xff]  ;;  %v1315_v29 = vpack.c.bf16 %v70_v20, %v62_v18  ;;  %v78_v32 = vld [vmem:[#allocation2 + $0x120] sm:$0xff]  ;;  %v88_v36 = vld [vmem:[#allocation2 + $0x170] sm:$0xff] }
  0x60   :  { %1284 = vmatpush1.bf16.msra.mxu1 %v1283_v48  ;;  %1206 = vmatprep.subr.bf16.mxu0 %v1205_v49  ;;  %v349_v48 = vld [vmem:[#allocation2 + $0x998] sm:$0xff]  ;;  %v86_v33 = vld [vmem:[#allocation2 + $0x160] sm:$0xff]  ;;  %v1399_v42 = vpack.c.bf16 %v88_v36, %v80_v34  ;;  %v96_v46 = vld [vmem:[#allocation2 + $0x1b0] sm:$0xff] }
  0x61   :  { %1286 = vmatprep.subr.bf16.mxu1 %v1285_v53  ;;  %v357_v49 = vld [vmem:[#allocation2 + $0x9d8] sm:$0xff]  ;;  %v346_v53 = vld [vmem:[#allocation2 + $0x980] sm:$0xff]  ;;  %v1319_v41 = vpack.c.bf16 %v86_v33, %v78_v32  ;;  %v136_v13 = vld [vmem:[#allocation2 + $0x2f0] sm:$0xff] }
  0x62   :  { %v1305_v56 = vpack.c.bf16 %v357_v49, %v349_v48  ;;  %v1227_v0 = vpack.c.bf16 %v354_v54, %v346_v53  ;;  %v105_v40 = vld [vmem:[#allocation2 + $0x1f8] sm:$0xff]  ;;  %v94_v44 = vld [vmem:[#allocation2 + $0x1a0] sm:$0xff]  ;;  %v104_v49 = vld [vmem:[#allocation2 + $0x1f0] sm:$0xff] }
  0x63   :  { %1208 = vmatpush1.bf16.msra.mxu0 %v1207_v60  ;;  %v55_v60 = vld [vmem:[#allocation2 + $0x68] sm:$0xff]  ;;  %v102_v45 = vld [vmem:[#allocation2 + $0x1e0] sm:$0xff]  ;;  %v121_v53 = vld [vmem:[#allocation2 + $0x278] sm:$0xff] }
  0x64   :  { %1288 = vmatpush1.bf16.msra.mxu1 %v1287_v61  ;;  %1210 = vmatprep.subr.bf16.mxu0 %v1209_v62  ;;  %v374_v61 = vsub.s32 2, %v1679_v59  ;;  %v49_v62 = vld [vmem:[#allocation2 + $0x38] sm:$0xff]  ;;  %v1323_v54 = vpack.c.bf16 %v102_v45, %v94_v44  ;;  %v118_v57 = vld [vmem:[#allocation2 + $0x260] sm:$0xff]  ;;  %v143_v14 = vld [vmem:[#allocation2 + $0x328] sm:$0xff] }
  0x65   :  { %1290 = vmatprep.subr.bf16.mxu1 %v1289_v2  ;;  %v1309_v2 = vpack.c.bf16 %v55_v60, %v47_v58  ;;  %v1389_v6 = vpack.c.bf16 %v57_v63, %v49_v62  ;;  %v112_v58 = vld [vmem:[#allocation2 + $0x230] sm:$0xff]  ;;  %v127_v63 = vld [vmem:[#allocation2 + $0x2a8] sm:$0xff]  ;;  %v166_v36 = vld [vmem:[#allocation2 + $0x3e0] sm:$0xff] }
  0x66   :  { %v120_v62 = vld [vmem:[#allocation2 + $0x270] sm:$0xff] }
  0x67   :  { %1212 = vmatpush1.bf16.msra.mxu0 %v1211_v10  ;;  %v63_v10 = vld [vmem:[#allocation2 + $0xa8] sm:$0xff]  ;;  %v1407_v4 = vpack.c.bf16 %v120_v62, %v112_v58  ;;  %v198_v62 = vld [vmem:[#allocation2 + $0x4e0] sm:$0xff] }
  0x68   :  { %1292 = vmatpush1.bf16.msra.mxu1 %v1291_v11  ;;  %1214 = vmatprep.subr.bf16.mxu0 %v1213_v12  ;;  %v71_v11 = vld [vmem:[#allocation2 + $0xe8] sm:$0xff]  ;;  %v1708_v12 = vrot.slane %v1685_v19, %v374_v61  ;;  %v81_v19 = vld [vmem:[#allocation2 + $0x138] sm:$0xff] }
  0x69   :  { %1294 = vmatprep.subr.bf16.mxu1 %v1293_v16  ;;  %v1391_v16 = vpack.c.bf16 %v56_v7, %v48_v5  ;;  %v1313_v17 = vpack.c.bf16 %v71_v11, %v63_v10  ;;  %v1397_v35 = vpack.c.bf16 %v89_v28, %v81_v19  ;;  %v134_v7 = vld [vmem:[#allocation2 + $0x2e0] sm:$0xff]  ;;  %v128_v10 = vld [vmem:[#allocation2 + $0x2b0] sm:$0xff]  ;;  %v159_v28 = vld [vmem:[#allocation2 + $0x3a8] sm:$0xff] }
  0x6a   :  { %487 = vmatmul.mubr.f32.vlgmr.msra.gmra.mrb[0].mxu0 %v1698_v21  ;;  %v1411_v20 = vpack.c.bf16 %v136_v13, %v128_v10  ;;  %v152_v19 = vld [vmem:[#allocation2 + $0x370] sm:$0xff]  ;;  %v214_v13 = vld [vmem:[#allocation2 + $0x560] sm:$0xff] }
  0x6b   :  { %1216 = vmatpush1.bf16.msra.mxu0 %v1215_v25  ;;  %629 = vmatmul.mubr.f32.vlgmr.msra.gmra.mrb[0].mxu1 %v1698_v21  ;;  %v72_v25 = vld [vmem:[#allocation2 + $0xf0] sm:$0xff] }
  0x6c   :  { %1296 = vmatpush1.bf16.msra.mxu1 %v1295_v26  ;;  %1218 = vmatprep.subr.bf16.mxu0 %v1217_v27  ;;  %v79_v26 = vld [vmem:[#allocation2 + $0x128] sm:$0xff]  ;;  %v1395_v30 = vpack.c.bf16 %v72_v25, %v64_v23  ;;  %v150_v25 = vld [vmem:[#allocation2 + $0x360] sm:$0xff] }
  0x6d   :  { %1298 = vmatprep.subr.bf16.mxu1 %v1297_v31  ;;  %557 = vmatprep.mubr.f32.mxu0 %v1632_v47  ;;  %v87_v27 = vld [vmem:[#allocation2 + $0x168] sm:$0xff] }
  0x6e   :  { %699 = vmatprep.mubr.f32.mxu1 %v1632_v47  ;;  %v1317_v31 = vpack.c.bf16 %v87_v27, %v79_v26  ;;  %v144_v26 = vld [vmem:[#allocation2 + $0x330] sm:$0xff] }
  0x6f   :  { %1220 = vmatpush1.bf16.msra.mxu0 %v1219_v37  ;;  %v95_v37 = vld [vmem:[#allocation2 + $0x1a8] sm:$0xff]  ;;  %v1415_v33 = vpack.c.bf16 %v152_v19, %v144_v26  ;;  %v230_v19 = vld [vmem:[#allocation2 + $0x5e0] sm:$0xff] }
  0x70   :  { %1300 = vmatpush1.bf16.msra.mxu1 %v1299_v38  ;;  %1222 = vmatprep.subr.bf16.mxu0 %v1221_v39  ;;  %v103_v38 = vld [vmem:[#allocation2 + $0x1e8] sm:$0xff]  ;;  %v97_v39 = vld [vmem:[#allocation2 + $0x1b8] sm:$0xff] }
  0x71   :  { %1302 = vmatprep.subr.bf16.mxu1 %v1301_v43  ;;  %v1321_v43 = vpack.c.bf16 %v103_v38, %v95_v37  ;;  %v1401_v48 = vpack.c.bf16 %v105_v40, %v97_v39  ;;  %v160_v37 = vld [vmem:[#allocation2 + $0x3b0] sm:$0xff]  ;;  %v175_v40 = vld [vmem:[#allocation2 + $0x428] sm:$0xff] }
  0x72   :  { %v168_v39 = vld [vmem:[#allocation2 + $0x3f0] sm:$0xff] }
  0x73   :  { %1224 = vmatpush1.bf16.msra.mxu0 %v1223_v50  ;;  %v111_v50 = vld [vmem:[#allocation2 + $0x228] sm:$0xff]  ;;  %v1419_v45 = vpack.c.bf16 %v168_v39, %v160_v37  ;;  %v246_v39 = vld [vmem:[#allocation2 + $0x660] sm:$0xff] }
  0x74   :  { %1304 = vmatpush1.bf16.msra.mxu1 %v1303_v51  ;;  %1226 = vmatprep.subr.bf16.mxu0 %v1225_v52  ;;  %v119_v51 = vld [vmem:[#allocation2 + $0x268] sm:$0xff]  ;;  %v113_v52 = vld [vmem:[#allocation2 + $0x238] sm:$0xff] }
  0x75   :  { %1306 = vmatprep.subr.bf16.mxu1 %v1305_v56  ;;  %v1325_v55 = vpack.c.bf16 %v119_v51, %v111_v50  ;;  %v110_v56 = vld [vmem:[#allocation2 + $0x220] sm:$0xff]  ;;  %v1405_v60 = vpack.c.bf16 %v121_v53, %v113_v52  ;;  %v176_v50 = vld [vmem:[#allocation2 + $0x430] sm:$0xff]  ;;  %v191_v53 = vld [vmem:[#allocation2 + $0x4a8] sm:$0xff] }
  0x76   :  { %v1327_v3 = vpack.c.bf16 %v118_v57, %v110_v56  ;;  %v184_v52 = vld [vmem:[#allocation2 + $0x470] sm:$0xff] }
  0x77   :  { %1228 = vmatpush1.bf16.msra.mxu0 %v1227_v0  ;;  %v135_v0 = vld [vmem:[#allocation2 + $0x2e8] sm:$0xff]  ;;  %v1423_v57 = vpack.c.bf16 %v184_v52, %v176_v50  ;;  %v262_v52 = vld [vmem:[#allocation2 + $0x6e0] sm:$0xff] }
  0x78   :  { %1308 = vmatpush1.bf16.msra.mxu1 %v1307_v1  ;;  %1310 = vmatprep.subr.bf16.mxu0 %v1309_v2  ;;  %v129_v1 = vld [vmem:[#allocation2 + $0x2b8] sm:$0xff]  ;;  %v1329_v5 = vpack.c.bf16 %v135_v0, %v127_v63  ;;  %v192_v63 = vld [vmem:[#allocation2 + $0x4b0] sm:$0xff] }
  0x79   :  { %1390 = vmatprep.subr.bf16.mxu1 %v1389_v6  ;;  %v137_v2 = vld [vmem:[#allocation2 + $0x2f8] sm:$0xff]  ;;  %v126_v6 = vld [vmem:[#allocation2 + $0x2a0] sm:$0xff] }
  0x7a   :  { %1137 = vmatmul.mubr.msk.f32.vlgmr.msra.gmra.mrb[0].mxu0 %vm419_vm0, %v1708_v12  ;;  %v1409_v11 = vpack.c.bf16 %v137_v2, %v129_v1  ;;  %v1331_v18 = vpack.c.bf16 %v134_v7, %v126_v6  ;;  %v200_v1 = vld [vmem:[#allocation2 + $0x4f0] sm:$0xff]  ;;  %v207_v2 = vld [vmem:[#allocation2 + $0x528] sm:$0xff] }
  0x7b   :  { %1138 = vmatmul.mubr.msk.f32.vlgmr.msra.gmra.mrb[0].mxu1 %vm419_vm0, %v1708_v12  ;;  %1312 = vmatpush1.bf16.msra.mxu0 %v1311_v15  ;;  %v151_v15 = vld [vmem:[#allocation2 + $0x368] sm:$0xff]  ;;  %v1427_v7 = vpack.c.bf16 %v200_v1, %v192_v63  ;;  %v278_v1 = vld [vmem:[#allocation2 + $0x760] sm:$0xff] }
  0x7c   :  { %1392 = vmatpush1.bf16.msra.mxu1 %v1391_v16  ;;  %1314 = vmatprep.subr.bf16.mxu0 %v1313_v17  ;;  %v145_v16 = vld [vmem:[#allocation2 + $0x338] sm:$0xff]  ;;  %v1333_v23 = vpack.c.bf16 %v151_v15, %v143_v14  ;;  %v208_v14 = vld [vmem:[#allocation2 + $0x530] sm:$0xff] }
  0x7d   :  { %1394 = vmatprep.subr.bf16.mxu1 %v1393_v24  ;;  %770 = vmatprep.mubr.f32.mxu0 %v1690_v22  ;;  %v153_v17 = vld [vmem:[#allocation2 + $0x378] sm:$0xff]  ;;  %v142_v24 = vld [vmem:[#allocation2 + $0x320] sm:$0xff] }
  0x7e   :  { %912 = vmatprep.mubr.f32.mxu1 %v1690_v22  ;;  %v1403_v22 = vpack.c.bf16 %v104_v49, %v96_v46  ;;  %v1413_v27 = vpack.c.bf16 %v153_v17, %v145_v16  ;;  %v1335_v32 = vpack.c.bf16 %v150_v25, %v142_v24  ;;  %v182_v49 = vld [vmem:[#allocation2 + $0x460] sm:$0xff]  ;;  %v216_v16 = vld [vmem:[#allocation2 + $0x570] sm:$0xff]  ;;  %v223_v17 = vld [vmem:[#allocation2 + $0x5a8] sm:$0xff] }
  0x7f   :  { %1316 = vmatpush1.bf16.msra.mxu0 %v1315_v29  ;;  %v167_v29 = vld [vmem:[#allocation2 + $0x3e8] sm:$0xff]  ;;  %v1431_v25 = vpack.c.bf16 %v216_v16, %v208_v14  ;;  %v294_v16 = vld [vmem:[#allocation2 + $0x7e0] sm:$0xff] }
  0x80   :  { %1396 = vmatpush1.bf16.msra.mxu1 %v1395_v30  ;;  %1318 = vmatprep.subr.bf16.mxu0 %v1317_v31  ;;  %v161_v30 = vld [vmem:[#allocation2 + $0x3b8] sm:$0xff]  ;;  %v1337_v34 = vpack.c.bf16 %v167_v29, %v159_v28  ;;  %v224_v28 = vld [vmem:[#allocation2 + $0x5b0] sm:$0xff] }
  0x81   :  { %1398 = vmatprep.subr.bf16.mxu1 %v1397_v35  ;;  %v169_v31 = vld [vmem:[#allocation2 + $0x3f8] sm:$0xff]  ;;  %v158_v35 = vld [vmem:[#allocation2 + $0x3a0] sm:$0xff] }
  0x82   :  { %v1417_v38 = vpack.c.bf16 %v169_v31, %v161_v30  ;;  %v1339_v44 = vpack.c.bf16 %v166_v36, %v158_v35  ;;  %v232_v30 = vld [vmem:[#allocation2 + $0x5f0] sm:$0xff]  ;;  %v239_v31 = vld [vmem:[#allocation2 + $0x628] sm:$0xff] }
  0x83   :  { %1320 = vmatpush1.bf16.msra.mxu0 %v1319_v41  ;;  %v183_v41 = vld [vmem:[#allocation2 + $0x468] sm:$0xff]  ;;  %v1435_v36 = vpack.c.bf16 %v232_v30, %v224_v28  ;;  %v310_v30 = vld [vmem:[#allocation2 + $0x860] sm:$0xff] }
  0x84   :  { %1400 = vmatpush1.bf16.msra.mxu1 %v1399_v42  ;;  %1322 = vmatprep.subr.bf16.mxu0 %v1321_v43  ;;  %v177_v42 = vld [vmem:[#allocation2 + $0x438] sm:$0xff]  ;;  %v1341_v46 = vpack.c.bf16 %v183_v41, %v175_v40  ;;  %v240_v40 = vld [vmem:[#allocation2 + $0x630] sm:$0xff] }
  0x85   :  { %1402 = vmatprep.subr.bf16.mxu1 %v1401_v48  ;;  %v185_v43 = vld [vmem:[#allocation2 + $0x478] sm:$0xff]  ;;  %v174_v48 = vld [vmem:[#allocation2 + $0x420] sm:$0xff] }
  0x86   :  { %v1421_v51 = vpack.c.bf16 %v185_v43, %v177_v42  ;;  %v1343_v56 = vpack.c.bf16 %v182_v49, %v174_v48  ;;  %v248_v42 = vld [vmem:[#allocation2 + $0x670] sm:$0xff]  ;;  %v255_v43 = vld [vmem:[#allocation2 + $0x6a8] sm:$0xff] }
  0x87   :  { %1324 = vmatpush1.bf16.msra.mxu0 %v1323_v54  ;;  %v199_v54 = vld [vmem:[#allocation2 + $0x4e8] sm:$0xff]  ;;  %v1439_v49 = vpack.c.bf16 %v248_v42, %v240_v40  ;;  %v326_v42 = vld [vmem:[#allocation2 + $0x8e0] sm:$0xff] }
  0x88   :  { %1404 = vmatpush1.bf16.msra.mxu1 %v1403_v22  ;;  %1326 = vmatprep.subr.bf16.mxu0 %v1325_v55  ;;  %v193_v22 = vld [vmem:[#allocation2 + $0x4b8] sm:$0xff]  ;;  %v1345_v58 = vpack.c.bf16 %v199_v54, %v191_v53  ;;  %v256_v53 = vld [vmem:[#allocation2 + $0x6b0] sm:$0xff] }
  0x89   :  { %1406 = vmatprep.subr.bf16.mxu1 %v1405_v60  ;;  %v201_v55 = vld [vmem:[#allocation2 + $0x4f8] sm:$0xff]  ;;  %v190_v60 = vld [vmem:[#allocation2 + $0x4a0] sm:$0xff] }
  0x8a   :  { %v1425_v0 = vpack.c.bf16 %v201_v55, %v193_v22  ;;  %v1347_v6 = vpack.c.bf16 %v198_v62, %v190_v60  ;;  %v264_v22 = vld [vmem:[#allocation2 + $0x6f0] sm:$0xff]  ;;  %v271_v55 = vld [vmem:[#allocation2 + $0x728] sm:$0xff] }
  0x8b   :  { %1328 = vmatpush1.bf16.msra.mxu0 %v1327_v3  ;;  %v215_v3 = vld [vmem:[#allocation2 + $0x568] sm:$0xff]  ;;  %v1443_v62 = vpack.c.bf16 %v264_v22, %v256_v53  ;;  %v342_v22 = vld [vmem:[#allocation2 + $0x960] sm:$0xff] }
  0x8c   :  { %1408 = vmatpush1.bf16.msra.mxu1 %v1407_v4  ;;  %1330 = vmatprep.subr.bf16.mxu0 %v1329_v5  ;;  %v209_v4 = vld [vmem:[#allocation2 + $0x538] sm:$0xff]  ;;  %v1349_v10 = vpack.c.bf16 %v215_v3, %v207_v2  ;;  %v272_v2 = vld [vmem:[#allocation2 + $0x730] sm:$0xff] }
  0x8d   :  { %1410 = vmatprep.subr.bf16.mxu1 %v1409_v11  ;;  %v217_v5 = vld [vmem:[#allocation2 + $0x578] sm:$0xff]  ;;  %v206_v11 = vld [vmem:[#allocation2 + $0x520] sm:$0xff] }
  0x8e   :  { %v1429_v15 = vpack.c.bf16 %v217_v5, %v209_v4  ;;  %v1351_v24 = vpack.c.bf16 %v214_v13, %v206_v11  ;;  %v280_v4 = vld [vmem:[#allocation2 + $0x770] sm:$0xff]  ;;  %v287_v5 = vld [vmem:[#allocation2 + $0x7a8] sm:$0xff] }
  0x8f   :  { %1332 = vmatpush1.bf16.msra.mxu0 %v1331_v18  ;;  %v231_v18 = vld [vmem:[#allocation2 + $0x5e8] sm:$0xff]  ;;  %v1447_v13 = vpack.c.bf16 %v280_v4, %v272_v2  ;;  %v350_v2 = vld [vmem:[#allocation2 + $0x9a0] sm:$0xff] }
  0x90   :  { %1412 = vmatpush1.bf16.msra.mxu1 %v1411_v20  ;;  %1334 = vmatprep.subr.bf16.mxu0 %v1333_v23  ;;  %v225_v20 = vld [vmem:[#allocation2 + $0x5b8] sm:$0xff]  ;;  %v1353_v26 = vpack.c.bf16 %v231_v18, %v223_v17  ;;  %v288_v17 = vld [vmem:[#allocation2 + $0x7b0] sm:$0xff] }
  0x91   :  { %1414 = vmatprep.subr.bf16.mxu1 %v1413_v27  ;;  %v233_v23 = vld [vmem:[#allocation2 + $0x5f8] sm:$0xff]  ;;  %v222_v27 = vld [vmem:[#allocation2 + $0x5a0] sm:$0xff] }
  0x92   :  { %v1433_v29 = vpack.c.bf16 %v233_v23, %v225_v20  ;;  %v1355_v35 = vpack.c.bf16 %v230_v19, %v222_v27  ;;  %v296_v20 = vld [vmem:[#allocation2 + $0x7f0] sm:$0xff]  ;;  %v303_v23 = vld [vmem:[#allocation2 + $0x828] sm:$0xff] }
  0x93   :  { %1336 = vmatpush1.bf16.msra.mxu0 %v1335_v32  ;;  %v247_v32 = vld [vmem:[#allocation2 + $0x668] sm:$0xff]  ;;  %v1451_v19 = vpack.c.bf16 %v296_v20, %v288_v17 }
  0x94   :  { %1416 = vmatpush1.bf16.msra.mxu1 %v1415_v33  ;;  %1338 = vmatprep.subr.bf16.mxu0 %v1337_v34  ;;  %v241_v33 = vld [vmem:[#allocation2 + $0x638] sm:$0xff]  ;;  %v1357_v37 = vpack.c.bf16 %v247_v32, %v239_v31  ;;  %v304_v31 = vld [vmem:[#allocation2 + $0x830] sm:$0xff] }
  0x95   :  { %1418 = vmatprep.subr.bf16.mxu1 %v1417_v38  ;;  %v249_v34 = vld [vmem:[#allocation2 + $0x678] sm:$0xff]  ;;  %v238_v38 = vld [vmem:[#allocation2 + $0x620] sm:$0xff] }
  0x96   :  { %v1437_v41 = vpack.c.bf16 %v249_v34, %v241_v33  ;;  %v1359_v48 = vpack.c.bf16 %v246_v39, %v238_v38  ;;  %v312_v33 = vld [vmem:[#allocation2 + $0x870] sm:$0xff]  ;;  %v319_v34 = vld [vmem:[#allocation2 + $0x8a8] sm:$0xff] }
  0x97   :  { %1340 = vmatpush1.bf16.msra.mxu0 %v1339_v44  ;;  %v263_v44 = vld [vmem:[#allocation2 + $0x6e8] sm:$0xff]  ;;  %v1455_v39 = vpack.c.bf16 %v312_v33, %v304_v31 }
  0x98   :  { %1420 = vmatpush1.bf16.msra.mxu1 %v1419_v45  ;;  %1342 = vmatprep.subr.bf16.mxu0 %v1341_v46  ;;  %v257_v45 = vld [vmem:[#allocation2 + $0x6b8] sm:$0xff]  ;;  %v1361_v50 = vpack.c.bf16 %v263_v44, %v255_v43  ;;  %v320_v43 = vld [vmem:[#allocation2 + $0x8b0] sm:$0xff] }
  0x99   :  { %1422 = vmatprep.subr.bf16.mxu1 %v1421_v51  ;;  %v265_v46 = vld [vmem:[#allocation2 + $0x6f8] sm:$0xff]  ;;  %v254_v51 = vld [vmem:[#allocation2 + $0x6a0] sm:$0xff] }
  0x9a   :  { %v1441_v54 = vpack.c.bf16 %v265_v46, %v257_v45  ;;  %v1363_v60 = vpack.c.bf16 %v262_v52, %v254_v51  ;;  %v328_v45 = vld [vmem:[#allocation2 + $0x8f0] sm:$0xff]  ;;  %v335_v46 = vld [vmem:[#allocation2 + $0x928] sm:$0xff] }
  0x9b   :  { %1344 = vmatpush1.bf16.msra.mxu0 %v1343_v56  ;;  %v279_v56 = vld [vmem:[#allocation2 + $0x768] sm:$0xff]  ;;  %v1459_v52 = vpack.c.bf16 %v328_v45, %v320_v43 }
  0x9c   :  { %1424 = vmatpush1.bf16.msra.mxu1 %v1423_v57  ;;  %1346 = vmatprep.subr.bf16.mxu0 %v1345_v58  ;;  %v273_v57 = vld [vmem:[#allocation2 + $0x738] sm:$0xff]  ;;  %v1365_v63 = vpack.c.bf16 %v279_v56, %v271_v55  ;;  %v336_v55 = vld [vmem:[#allocation2 + $0x930] sm:$0xff] }
  0x9d   :  { %1426 = vmatprep.subr.bf16.mxu1 %v1425_v0  ;;  %v281_v58 = vld [vmem:[#allocation2 + $0x778] sm:$0xff]  ;;  %v270_v0 = vld [vmem:[#allocation2 + $0x720] sm:$0xff] }
  0x9e   :  { %v1445_v3 = vpack.c.bf16 %v281_v58, %v273_v57  ;;  %v1367_v11 = vpack.c.bf16 %v278_v1, %v270_v0  ;;  %v344_v57 = vld [vmem:[#allocation2 + $0x970] sm:$0xff]  ;;  %v351_v58 = vld [vmem:[#allocation2 + $0x9a8] sm:$0xff] }
  0x9f   :  { %1348 = vmatpush1.bf16.msra.mxu0 %v1347_v6  ;;  %v295_v6 = vld [vmem:[#allocation2 + $0x7e8] sm:$0xff]  ;;  %v1463_v0 = vpack.c.bf16 %v344_v57, %v336_v55 }
  0xa0   :  { %1428 = vmatpush1.bf16.msra.mxu1 %v1427_v7  ;;  %1350 = vmatprep.subr.bf16.mxu0 %v1349_v10  ;;  %v289_v7 = vld [vmem:[#allocation2 + $0x7b8] sm:$0xff]  ;;  %v1369_v14 = vpack.c.bf16 %v295_v6, %v287_v5  ;;  %v352_v5 = vld [vmem:[#allocation2 + $0x9b0] sm:$0xff] }
  0xa1   :  { %1430 = vmatprep.subr.bf16.mxu1 %v1429_v15  ;;  %v297_v10 = vld [vmem:[#allocation2 + $0x7f8] sm:$0xff]  ;;  %v286_v15 = vld [vmem:[#allocation2 + $0x7a0] sm:$0xff]  ;;  %v360_v6 = vld [vmem:[#allocation2 + $0x9f0] sm:$0xff] }
  0xa2   :  { %v1449_v18 = vpack.c.bf16 %v297_v10, %v289_v7  ;;  %v1371_v27 = vpack.c.bf16 %v294_v16, %v286_v15  ;;  %v1467_v10 = vpack.c.bf16 %v360_v6, %v352_v5 }
  0xa3   :  { %1352 = vmatpush1.bf16.msra.mxu0 %v1351_v24  ;;  %v311_v24 = vld [vmem:[#allocation2 + $0x868] sm:$0xff] }
  0xa4   :  { %1432 = vmatpush1.bf16.msra.mxu1 %v1431_v25  ;;  %1354 = vmatprep.subr.bf16.mxu0 %v1353_v26  ;;  %v305_v25 = vld [vmem:[#allocation2 + $0x838] sm:$0xff]  ;;  %v1373_v28 = vpack.c.bf16 %v311_v24, %v303_v23 }
  0xa5   :  { %1434 = vmatprep.subr.bf16.mxu1 %v1433_v29  ;;  %v313_v26 = vld [vmem:[#allocation2 + $0x878] sm:$0xff]  ;;  %v302_v29 = vld [vmem:[#allocation2 + $0x820] sm:$0xff] }
  0xa6   :  { %v1453_v32 = vpack.c.bf16 %v313_v26, %v305_v25  ;;  %v1375_v38 = vpack.c.bf16 %v310_v30, %v302_v29 }
  0xa7   :  { %1356 = vmatpush1.bf16.msra.mxu0 %v1355_v35  ;;  %v327_v35 = vld [vmem:[#allocation2 + $0x8e8] sm:$0xff] }
  0xa8   :  { %1436 = vmatpush1.bf16.msra.mxu1 %v1435_v36  ;;  %1358 = vmatprep.subr.bf16.mxu0 %v1357_v37  ;;  %v321_v36 = vld [vmem:[#allocation2 + $0x8b8] sm:$0xff]  ;;  %v1377_v40 = vpack.c.bf16 %v327_v35, %v319_v34 }
  0xa9   :  { %1438 = vmatprep.subr.bf16.mxu1 %v1437_v41  ;;  %v329_v37 = vld [vmem:[#allocation2 + $0x8f8] sm:$0xff]  ;;  %v318_v41 = vld [vmem:[#allocation2 + $0x8a0] sm:$0xff] }
  0xaa   :  { %v1457_v44 = vpack.c.bf16 %v329_v37, %v321_v36  ;;  %v1379_v51 = vpack.c.bf16 %v326_v42, %v318_v41 }
  0xab   :  { %1360 = vmatpush1.bf16.msra.mxu0 %v1359_v48  ;;  %v343_v48 = vld [vmem:[#allocation2 + $0x968] sm:$0xff] }
  0xac   :  { %1440 = vmatpush1.bf16.msra.mxu1 %v1439_v49  ;;  %1362 = vmatprep.subr.bf16.mxu0 %v1361_v50  ;;  %v337_v49 = vld [vmem:[#allocation2 + $0x938] sm:$0xff]  ;;  %v1381_v53 = vpack.c.bf16 %v343_v48, %v335_v46  ;;  %v1633_v48 = vmov 1966171168  }
  0xad   :  { %1442 = vmatprep.subr.bf16.mxu1 %v1441_v54  ;;  %v345_v50 = vld [vmem:[#allocation2 + $0x978] sm:$0xff]  ;;  %v334_v54 = vld [vmem:[#allocation2 + $0x920] sm:$0xff] }
  0xae   :  { %v1461_v56 = vpack.c.bf16 %v345_v50, %v337_v49  ;;  %v1075_v49 = vunpack.c.l.s4 %v1633_v48 }
  0xaf   :  { %1364 = vmatpush1.bf16.msra.mxu0 %v1363_v60  ;;  %v359_v60 = vld [vmem:[#allocation2 + $0x9e8] sm:$0xff] }
  0xb0   :  { %1444 = vmatpush1.bf16.msra.mxu1 %v1443_v62  ;;  %1366 = vmatprep.subr.bf16.mxu0 %v1365_v63  ;;  %v353_v62 = vld [vmem:[#allocation2 + $0x9b8] sm:$0xff]  ;;  %v1385_v1 = vpack.c.bf16 %v359_v60, %v351_v58  ;;  %v1076_v50 = vunpack.c.0.s8 %v1075_v49 }
  0xb1   :  { %1446 = vmatprep.subr.bf16.mxu1 %v1445_v3  ;;  %v361_v63 = vld [vmem:[#allocation2 + $0x9f8] sm:$0xff]  ;;  %v358_v3 = vld [vmem:[#allocation2 + $0x9e0] sm:$0xff] }
  0xb2   :  { %v1465_v4 = vpack.c.bf16 %v361_v63, %v353_v62  ;;  %v1387_v7 = vpack.c.bf16 %v358_v3, %v350_v2  ;;  %v397_v62 = vsub.s32 4, %v1679_v59  ;;  %v405_v63 = vsub.s32 6, %v1679_v59 }
  0xb3   :  { %1368 = vmatpush1.bf16.msra.mxu0 %v1367_v11  ;;  %v393_v11 = vsub.s32 3, %v1679_v59 }
  0xb4   :  { %1448 = vmatpush1.bf16.msra.mxu1 %v1447_v13  ;;  %1370 = vmatprep.subr.bf16.mxu0 %v1369_v14 }
  0xb5   :  { %1450 = vmatprep.subr.bf16.mxu1 %v1449_v18 }
  0xb7   :  { %1372 = vmatpush1.bf16.msra.mxu0 %v1371_v27 }
  0xb8   :  { %1452 = vmatpush1.bf16.msra.mxu1 %v1451_v19  ;;  %1374 = vmatprep.subr.bf16.mxu0 %v1373_v28 }
  0xb9   :  { %1454 = vmatprep.subr.bf16.mxu1 %v1453_v32 }
  0xba   :  { %771 = vmatmul.mubr.f32.vlgmr.msra.gmra.mrb[2].mxu0 %v1698_v21 }
  0xbb   :  { %1376 = vmatpush1.bf16.msra.mxu0 %v1375_v38  ;;  %913 = vmatmul.mubr.f32.vlgmr.msra.gmra.mrb[2].mxu1 %v1698_v21  ;;  %v1383_v21 = vpack.c.bf16 %v342_v22, %v334_v54 }
  0xbc   :  { %1456 = vmatpush1.bf16.msra.mxu1 %v1455_v39  ;;  %1378 = vmatprep.subr.bf16.mxu0 %v1377_v40 }
  0xbd   :  { %1458 = vmatprep.subr.bf16.mxu1 %v1457_v44  ;;  %841 = vmatprep.mubr.f32.mxu0 %v1632_v47 }
  0xbe   :  { %983 = vmatprep.mubr.f32.mxu1 %v1632_v47  ;;  %v1724_v47 = vld [vmem:[#allocation5] sm:$0xff] }
  0xbf   :  { %1380 = vmatpush1.bf16.msra.mxu0 %v1379_v51  ;;  %v382_v13 = vrot.slane %v1724_v47, %v366_v9  ;;  %v390_v14 = vrot.slane %v1724_v47, %v374_v61  ;;  %v386_v15 = vrot.slane %v1724_v47, %v370_v8  ;;  %v394_v16 = vrot.slane %v1724_v47, %v393_v11 }
  0xc0   :  { %1460 = vmatpush1.bf16.msra.mxu1 %v1459_v52  ;;  %1382 = vmatprep.subr.bf16.mxu0 %v1381_v53  ;;  %v1738_v53 = vsub.s32 %v1076_v50, %v1679_v59  ;;  %v406_v2 = vrot.slane %v1724_v47, %v405_v63 }
  0xc1   :  { %1462 = vmatprep.subr.bf16.mxu1 %v1461_v56 }
  0xc3   :  { %1384 = vmatpush1.bf16.msra.mxu0 %v1383_v21  ;;  %v401_v21 = vsub.s32 5, %v1679_v59 }
  0xc4   :  { %1464 = vmatpush1.bf16.msra.mxu1 %v1463_v0  ;;  %1386 = vmatprep.subr.bf16.mxu0 %v1385_v1  ;;  %v409_v0 = vsub.s32 7, %v1679_v59  ;;  %v398_v1 = vrot.slane %v1724_v47, %v397_v62 }
  0xc5   :  { %1466 = vmatprep.subr.bf16.mxu1 %v1465_v4  ;;  %v402_v3 = vrot.slane %v1724_v47, %v401_v21 }
  0xc6   :  { %v410_v4 = vrot.slane %v1724_v47, %v409_v0 }
  0xc7   :  { %1388 = vmatpush1.bf16.msra.mxu0 %v1387_v7 }
  0xc8   :  { %1468 = vmatpush1.bf16.msra.mxu1 %v1467_v10 }
  0xca   :  { %1139 = vmatmul.mubr.msk.f32.vlgmr.msra.gmra.mrb[2].mxu0 %vm419_vm0, %v1708_v12 }
  0xcb   :  { %1140 = vmatmul.mubr.msk.f32.vlgmr.msra.gmra.mrb[2].mxu1 %vm419_vm0, %v1708_v12 }
 0x14d   :  { %v559_v17 = vpop.f32.mrb[0].mxu0 }
 0x14e   :  { %v1469_v12 = vadd.f32 %v559_v17, %v382_v13  ;;  %v701_v18 = vpop.f32.mrb[0].mxu1  ;;  %v561_v20 = vpop.f32.mrb[1].mxu0 }
 0x14f   :  { %v1471_v23 = vadd.f32 %v701_v18, %v390_v14  ;;  %v1470_v24 = vadd.f32 %v561_v20, %v386_v15  ;;  %v703_v25 = vpop.f32.mrb[1].mxu1 }
 0x150   :  { %v990_v26 = vmax.f32 %v1469_v12, 0.0  ;;  %v1472_v27 = vadd.f32 %v703_v25, %v394_v16 }
 0x151   :  { %v992_v9 = vmax.f32 %v1471_v23, 0.0  ;;  %v991_v19 = vmax.f32 %v1470_v24, 0.0 }
 0x152   :  { %v1141_v28 = vmul.f32 -1.442695, %v990_v26  ;;  %v993_v29 = vmax.f32 %v1472_v27, 0.0 }
 0x153   :  { %v1143_v61 = vmul.f32 -1.442695, %v992_v9  ;;  %v1142_v30 = vmul.f32 -1.442695, %v991_v19 }
 0x154   :  { %1492 = vpow2.f32 %v1141_v28  ;;  %v1144_v31 = vmul.f32 -1.442695, %v993_v29 }
 0x155   :  { %1494 = vpow2.f32 %v1143_v61 }
 0x156   :  { %1496 = vpow2.f32 %v1142_v30 }
 0x157   :  { %1498 = vpow2.f32 %v1144_v31 }
 0x15e   :  { %v1493_v8 = vpop.eup %1492 }
 0x15f   :  { %v1495_v32 = vpop.eup %1494  ;;  %v1022_v33 = vadd.f32 1.0, %v1493_v8 }
 0x160   :  { %v1497_v34 = vpop.eup %1496  ;;  %v1024_v35 = vadd.f32 1.0, %v1495_v32 }
 0x161   :  { %v1499_v36 = vpop.eup %1498  ;;  %1500 = vrcp.f32 %v1022_v33  ;;  %v1023_v37 = vadd.f32 1.0, %v1497_v34 }
 0x162   :  { %1502 = vrcp.f32 %v1024_v35  ;;  %v1025_v38 = vadd.f32 1.0, %v1499_v36 }
 0x163   :  { %1504 = vrcp.f32 %v1023_v37 }
 0x164   :  { %1506 = vrcp.f32 %v1025_v38 }
 0x16b   :  { %v1501_v39 = vpop.eup %1500 }
 0x16c   :  { %v1503_v40 = vpop.eup %1502  ;;  %1508 = vtanh.f32 %v1501_v39 }
 0x16d   :  { %v1505_v41 = vpop.eup %1504  ;;  %1510 = vtanh.f32 %v1503_v40 }
 0x16e   :  { %v1507_v42 = vpop.eup %1506  ;;  %1512 = vtanh.f32 %v1505_v41 }
 0x16f   :  { %1514 = vtanh.f32 %v1507_v42 }
 0x176   :  { %v1509_v43 = vpop.eup %1508 }
 0x177   :  { %v1511_v44 = vpop.eup %1510  ;;  %1516 = vtanh.f32 %v1509_v43 }
 0x178   :  { %v1513_v45 = vpop.eup %1512  ;;  %1518 = vtanh.f32 %v1511_v44 }
 0x179   :  { %v1515_v46 = vpop.eup %1514  ;;  %1520 = vtanh.f32 %v1513_v45 }
 0x17a   :  { %1522 = vtanh.f32 %v1515_v46 }
 0x181   :  { %v1517_v51 = vpop.eup %1516 }
 0x182   :  { %v1519_v52 = vpop.eup %1518 }
 0x183   :  { %v1521_v54 = vpop.eup %1520 }
 0x184   :  { %v1523_v22 = vpop.eup %1522  ;;  %v1070_v55 = vcombine.low %v1517_v51, %v1521_v54 }
 0x185   :  { %v1071_v56 = vcombine.low %v1519_v52, %v1523_v22 }
 0x186   :  { %v1741_v57 = vrot.slane %v1070_v55, %v1738_v53 }
 0x187   :  { %v1744_v58 = vrot.slane %v1071_v56, %v1738_v53 }
 0x189   :  { %v1102_v60 = vcombine.low %v1741_v57, %v1744_v58 }
 0x18b   :  { %v1110_v45 = vrot.slane %v1102_v60, %v1738_v53 }
 0x19d   :  { %v843_v5 = vpop.f32.mrb[2].mxu0 }
 0x19e   :  { %v1473_v6 = vadd.f32 %v843_v5, %v398_v1  ;;  %v985_v7 = vpop.f32.mrb[2].mxu1  ;;  %v845_v10 = vpop.f32.mrb[3].mxu0 }
 0x19f   :  { %v1475_v11 = vadd.f32 %v985_v7, %v406_v2  ;;  %v1474_v13 = vadd.f32 %v845_v10, %v402_v3  ;;  %v987_v14 = vpop.f32.mrb[3].mxu1 }
 0x1a0   :  { %v994_v15 = vmax.f32 %v1473_v6, 0.0  ;;  %v1476_v16 = vadd.f32 %v987_v14, %v410_v4 }
 0x1a1   :  { %v996_v17 = vmax.f32 %v1475_v11, 0.0  ;;  %v995_v12 = vmax.f32 %v1474_v13, 0.0 }
 0x1a2   :  { %v1145_v59 = vmul.f32 -1.442695, %v994_v15  ;;  %v997_v18 = vmax.f32 %v1476_v16, 0.0 }
 0x1a3   :  { %v1147_v20 = vmul.f32 -1.442695, %v996_v17  ;;  %v1146_v23 = vmul.f32 -1.442695, %v995_v12 }
 0x1a4   :  { %1524 = vpow2.f32 %v1145_v59  ;;  %v1148_v24 = vmul.f32 -1.442695, %v997_v18 }
 0x1a5   :  { %1526 = vpow2.f32 %v1147_v20 }
 0x1a6   :  { %1528 = vpow2.f32 %v1146_v23 }
 0x1a7   :  { %1530 = vpow2.f32 %v1148_v24 }
 0x1ae   :  { %v1525_v47 = vpop.eup %1524 }
 0x1af   :  { %v1527_v25 = vpop.eup %1526  ;;  %v1026_v26 = vadd.f32 1.0, %v1525_v47 }
 0x1b0   :  { %v1529_v27 = vpop.eup %1528  ;;  %v1028_v9 = vadd.f32 1.0, %v1527_v25 }
 0x1b1   :  { %v1531_v19 = vpop.eup %1530  ;;  %1532 = vrcp.f32 %v1026_v26  ;;  %v1027_v28 = vadd.f32 1.0, %v1529_v27 }
 0x1b2   :  { %1534 = vrcp.f32 %v1028_v9  ;;  %v1029_v29 = vadd.f32 1.0, %v1531_v19 }
 0x1b3   :  { %1536 = vrcp.f32 %v1027_v28 }
 0x1b4   :  { %1538 = vrcp.f32 %v1029_v29 }
 0x1bb   :  { %v1533_v61 = vpop.eup %1532 }
 0x1bc   :  { %v1535_v30 = vpop.eup %1534  ;;  %1540 = vtanh.f32 %v1533_v61 }
 0x1bd   :  { %v1537_v31 = vpop.eup %1536  ;;  %1542 = vtanh.f32 %v1535_v30 }
 0x1be   :  { %v1539_v8 = vpop.eup %1538  ;;  %1544 = vtanh.f32 %v1537_v31 }
 0x1bf   :  { %1546 = vtanh.f32 %v1539_v8 }
 0x1c6   :  { %v1541_v32 = vpop.eup %1540 }
 0x1c7   :  { %v1543_v33 = vpop.eup %1542  ;;  %1548 = vtanh.f32 %v1541_v32 }
 0x1c8   :  { %v1545_v34 = vpop.eup %1544  ;;  %1550 = vtanh.f32 %v1543_v33 }
 0x1c9   :  { %v1547_v35 = vpop.eup %1546  ;;  %1552 = vtanh.f32 %v1545_v34 }
 0x1ca   :  { %1554 = vtanh.f32 %v1547_v35 }
 0x1d1   :  { %v1549_v36 = vpop.eup %1548 }
 0x1d2   :  { %v1551_v37 = vpop.eup %1550 }
 0x1d3   :  { %v1553_v38 = vpop.eup %1552 }
 0x1d4   :  { %v1555_v39 = vpop.eup %1554  ;;  %v1072_v40 = vcombine.low %v1549_v36, %v1553_v38 }
 0x1d5   :  { %v1073_v41 = vcombine.low %v1551_v37, %v1555_v39 }
 0x1d6   :  { %v1094_v42 = vrot.slane %v1072_v40, %v1738_v53 }
 0x1d7   :  { %v1101_v43 = vrot.slane %v1073_v41, %v1738_v53 }
 0x1d9   :  { %v1103_v44 = vcombine.low %v1094_v42, %v1101_v43 }
 0x1db   :  { %v1117_v46 = vrot.slane %v1103_v44, %v1738_v53 }
 0x1dd   :  { %v1118_v48 = vcombine.low %v1110_v45, %v1117_v46 }
 0x1df   :  { %1120 = vst [vmem:[#allocation7] sm:$0xff] %v1118_v48 }
 0x1e0   :  { %1611 = shalt.err (!%p1608_p6)
}
 0x1e1   :  { %s1612_s15 = scalar_lea.hbm %s1778_s3, 128 }
 0x1e2   :  { %p1613_p7 = scmp.ne.s32.totalorder %s1778_s3, %s1612_s15  ;;  %p1616_p8 = scmp.lt.u32.totalorder %s1612_s15, %s1778_s3 }
 0x1e4   :  { %p1618_p9 = pnand %p1616_p8, %p1613_p7 }
 0x1e6   :  { %1621 = shalt.err (!%p1618_p9)
}
 0x1e7   :  { %1130 = dma.vmem_to_hbm [thread:$0]  %s1128_s11, 128, %s1778_s3, [#allocation4]  }
 0x1e8   :  { %1626 = dma.done.wait [#allocation4], 128  }
 0x1e9   :  { %1627 = vsyncadd [#allocation4], 4294967168 }
 0x1ea   :  { %1134 = vsyncpa [#allocation3], 1 }
 0x1eb   :  { %1135 = vsyncpa [#allocation6], 1 }
 0x1ec   :  { %1136 = vsyncpa [#allocation4], 1 }

</bundles_post_ra>
